<compile_context>
chip_gen: v7x
topology: tpu7x:2x2x1
jax: 0.10.0
libtpu: 0.0.40
codegen_flags: <defaults>
</compile_context>

<pallas_src>
import functools
import math

import jax
import jax.numpy as jnp
from jax.experimental import pallas as pl
from jax.experimental.pallas import tpu as pltpu

_LANE = 128


def _round_up(c, m=_LANE):
    return ((c + m - 1) // m) * m


# -----------------------------------------------------------------------------
# Fused conv + BN (+ residual) (+ ReLU) Pallas kernel
# -----------------------------------------------------------------------------
def _conv_bn_kernel(*refs, num_taps, apply_relu, has_residual):
    """One grid step: acc += x_tap @ w_tap; on the last tap apply BN/res/ReLU.

    Grid = (N, M_blocks, Cout_blocks, taps); the tap axis is the reduction axis
    and is innermost, so the VMEM scratch accumulator is reset at tap 0 and
    finalized at the last tap for each output tile.

    Ref shapes (size-1 leading dims squeezed away by the BlockSpecs):
      x_ref   : (BM, Cin_p)   one unit-stride im2col tap tile
      w_ref   : (Cin_p, BCO)  matching weight slice
      sc_ref  : (1, BCO)      folded BN scale
      sh_ref  : (1, BCO)      folded BN shift
      res_ref : (BM, BCO)     optional residual tile
      o_ref   : (BM, BCO)     output tile
      acc_ref : (BM, BCO) f32 VMEM scratch accumulator
    """
    if has_residual:
        x_ref, w_ref, sc_ref, sh_ref, res_ref, o_ref, acc_ref = refs
    else:
        x_ref, w_ref, sc_ref, sh_ref, o_ref, acc_ref = refs
        res_ref = None

    t = pl.program_id(3)

    @pl.when(t == 0)
    def _init():
        acc_ref[...] = jnp.zeros_like(acc_ref)

    acc_ref[...] += jnp.dot(x_ref[...], w_ref[...],
                            preferred_element_type=jnp.float32)

    @pl.when(t == num_taps - 1)
    def _finalize():
        y = acc_ref[...] * sc_ref[...] + sh_ref[...]
        if has_residual:
            y = y + res_ref[...]
        if apply_relu:
            y = jnp.maximum(y, 0.0)
        o_ref[...] = y.astype(o_ref.dtype)


@functools.partial(jax.jit, static_argnames=("stride", "relu"))
def conv_bn_act(x, w_taps, scale, shift, residual=None, *, stride, relu):
    """Fused Conv2d(pad=(k-1)//2, bias=False) + BN affine [+ residual] [+ ReLU].

    x        : (N, H, W, Cin_p)  NHWC, channels already padded to a 128 multiple
    w_taps   : (kH*kW, Cin_p, Cout_p)  HWIO weights, channels padded, taps flat
    scale    : (1, Cout_p)   folded BN scale  (gamma / sqrt(var + eps))
    shift    : (1, Cout_p)   folded BN shift  (beta - mean * scale)
    residual : optional (N, H_out, W_out, Cout_p), added before the ReLU
    returns  : (N, H_out, W_out, Cout_p)
    """
    n, h, w_in, cin_p = x.shape
    num_taps, _, cout_p = w_taps.shape
    k = int(round(math.sqrt(num_taps)))
    pad = (k - 1) // 2
    h_out = (h + 2 * pad - k) // stride + 1
    w_out = (w_in + 2 * pad - k) // stride + 1
    m = h_out * w_out

    # ---- wrapper-side layout work: spatial pad + unit-stride tap extraction ----
    x_pad = jnp.pad(x, ((0, 0), (pad, pad), (pad, pad), (0, 0)))
    taps = []
    for kh in range(k):
        for kw in range(k):
            sl = jax.lax.slice(
                x_pad,
                (0, kh, kw, 0),
                (n, kh + (h_out - 1) * stride + 1,
                 kw + (w_out - 1) * stride + 1, cin_p),
                (1, stride, stride, 1))
            taps.append(sl.reshape(n, m, cin_p))
    x_taps = jnp.stack(taps, axis=0)            # (T, N, M, Cin_p)

    # ---- tiling ----
    bm = 256 if m % 256 == 0 else m             # M-row block (full M when small)
    bco = _LANE                                 # lane-dense Cout block
    grid = (n, m // bm, cout_p // bco, num_taps)

    in_specs = [
        pl.BlockSpec((None, None, bm, cin_p), lambda ni, mi, ci, ti: (ti, ni, mi, 0)),
        pl.BlockSpec((None, cin_p, bco),      lambda ni, mi, ci, ti: (ti, 0, ci)),
        pl.BlockSpec((1, bco),                lambda ni, mi, ci, ti: (0, ci)),
        pl.BlockSpec((1, bco),                lambda ni, mi, ci, ti: (0, ci)),
    ]
    args = [x_taps, w_taps, scale, shift]
    has_res = residual is not None
    if has_res:
        in_specs.append(
            pl.BlockSpec((None, bm, bco), lambda ni, mi, ci, ti: (ni, mi, ci)))
        args.append(residual.reshape(n, m, cout_p))

    bytes_accessed = 4 * (x_taps.size + w_taps.size + n * m * cout_p)
    if has_res:
        bytes_accessed += 4 * n * m * cout_p

    kernel = functools.partial(_conv_bn_kernel, num_taps=num_taps,
                               apply_relu=relu, has_residual=has_res)

    out = pl.pallas_call(
        kernel,
        out_shape=jax.ShapeDtypeStruct((n, m, cout_p), jnp.float32),
        grid=grid,
        in_specs=in_specs,
        out_specs=pl.BlockSpec((None, bm, bco), lambda ni, mi, ci, ti: (ni, mi, ci)),
        scratch_shapes=[pltpu.VMEM((bm, bco), jnp.float32)],
        compiler_params=pltpu.CompilerParams(
            dimension_semantics=("parallel", "parallel", "parallel", "arbitrary"),
            vmem_limit_bytes=32 * 1024 * 1024),
        cost_estimate=pl.CostEstimate(
            flops=2 * n * m * cin_p * cout_p * num_taps,
            transcendentals=0,
            bytes_accessed=bytes_accessed),
    )(*args)

    return out.reshape(n, h_out, w_out, cout_p)


# -----------------------------------------------------------------------------
# Parameters (deterministic init mirroring dfnetv2.__init__)
# -----------------------------------------------------------------------------
class ConvBNParams:
    """Conv2d(bias=False) weights + folded inference-mode BatchNorm affine."""

    def __init__(self, key, cin, cout, k, stride):
        self.cin, self.cout, self.k, self.stride = cin, cout, k, stride
        std = math.sqrt(2.0 / (k * k * cout))           # dfnetv2 init
        self.w_oihw = std * jax.random.normal(key, (cout, cin, k, k), jnp.float32)

        eps = 1e-5
        gamma = jnp.ones((cout,), jnp.float32)          # BN weight = 1
        beta = jnp.zeros((cout,), jnp.float32)          # BN bias = 0
        r_mean = jnp.zeros((cout,), jnp.float32)
        r_var = jnp.ones((cout,), jnp.float32)
        self.scale = gamma / jnp.sqrt(r_var + eps)
        self.shift = beta - r_mean * self.scale

        # Kernel layout: HWIO, channels zero-padded to 128 multiples, taps flat.
        cin_p, cout_p = _round_up(cin), _round_up(cout)
        w_hwio = jnp.transpose(self.w_oihw, (2, 3, 1, 0))
        w_hwio = jnp.pad(w_hwio, ((0, 0), (0, 0), (0, cin_p - cin), (0, cout_p - cout)))
        self.w_taps = w_hwio.reshape(k * k, cin_p, cout_p)
        self.scale_p = jnp.pad(self.scale, (0, cout_p - cout)).reshape(1, cout_p)
        self.shift_p = jnp.pad(self.shift, (0, cout_p - cout)).reshape(1, cout_p)


def _to_internal(x_nchw):
    x = jnp.transpose(x_nchw, (0, 2, 3, 1)).astype(jnp.float32)
    c = x.shape[-1]
    return jnp.pad(x, ((0, 0), (0, 0), (0, 0), (0, _round_up(c) - c)))


def _from_internal(x_nhwc, c):
    return jnp.transpose(x_nhwc[..., :c], (0, 3, 1, 2))


class DFNetV2Pallas:
    """dfnetv2 forward ((x3, x4, x5)) built on the fused Pallas conv kernel."""

    def __init__(self, key):
        keys = iter(jax.random.split(key, 64))
        self._new_conv = lambda cin, cout, k, s: ConvBNParams(next(keys), cin, cout, k, s)

        self.stage1 = [self._new_conv(3, 32, 3, 2), self._new_conv(32, 64, 3, 2)]
        self.inplanes = 64
        self.stage2_1 = self._make_layer(64, 2, 2)
        self.stage2_2 = self._make_layer(128, 1, 1)
        self.stage3_1 = self._make_layer(128, 10, 2)
        self.stage3_2 = self._make_layer(256, 1, 1)
        self.stage4_1 = self._make_layer(256, 4, 2)
        self.stage4_2 = self._make_layer(512, 2, 1)

    def _make_layer(self, planes, blocks, stride):
        layers = []
        for i in range(blocks):
            s = stride if i == 0 else 1
            down = None
            if s != 1 or self.inplanes != planes:
                down = self._new_conv(self.inplanes, planes, 1, s)
            layers.append(dict(conv1=self._new_conv(self.inplanes, planes, 3, s),
                               conv2=self._new_conv(planes, planes, 3, 1),
                               down=down))
            self.inplanes = planes
        return layers

    @staticmethod
    def _apply(cb, x, relu, residual=None):
        return conv_bn_act(x, cb.w_taps, cb.scale_p, cb.shift_p, residual,
                           stride=cb.stride, relu=relu)

    def _run_stage(self, blocks, x):
        for blk in blocks:
            out = self._apply(blk["conv1"], x, relu=True)
            if blk["down"] is not None:
                res = self._apply(blk["down"], x, relu=False)
            else:
                res = x
            x = self._apply(blk["conv2"], out, relu=True, residual=res)
        return x

    def __call__(self, x_nchw):
        x = _to_internal(x_nchw)
        for cb in self.stage1:
            x = self._apply(cb, x, relu=True)
        x = self._run_stage(self.stage2_1, x)
        x3 = self._run_stage(self.stage2_2, x)
        x4 = self._run_stage(self.stage3_1, x3)
        x4 = self._run_stage(self.stage3_2, x4)
        x5 = self._run_stage(self.stage4_1, x4)
        x5 = self._run_stage(self.stage4_2, x5)
        return (_from_internal(x3, 128), _from_internal(x4, 256), _from_internal(x5, 512))


# -----------------------------------------------------------------------------
# Pure-JAX reference (lax.conv) for correctness checking
# -----------------------------------------------------------------------------
def _ref_conv_bn(x, cb, relu, residual=None):
    pad = (cb.k - 1) // 2
    y = jax.lax.conv_general_dilated(
        x, cb.w_oihw, window_strides=(cb.stride, cb.stride),
        padding=[(pad, pad), (pad, pad)],
        dimension_numbers=("NCHW", "OIHW", "NCHW"),
        precision=jax.lax.Precision.HIGHEST)
    y = y * cb.scale[None, :, None, None] + cb.shift[None, :, None, None]
    if residual is not None:
        y = y + residual
    return jnp.maximum(y, 0.0) if relu else y


def reference_forward(model, x):
    def run_stage(blocks, x):
        for blk in blocks:
            out = _ref_conv_bn(x, blk["conv1"], relu=True)
            res = _ref_conv_bn(x, blk["down"], relu=False) if blk["down"] is not None else x
            x = _ref_conv_bn(out, blk["conv2"], relu=True, residual=res)
        return x

    for cb in model.stage1:
        x = _ref_conv_bn(x, cb, relu=True)
    x = run_stage(model.stage2_1, x)
    x3 = run_stage(model.stage2_2, x)
    x4 = run_stage(model.stage3_1, x3)
    x4 = run_stage(model.stage3_2, x4)
    x5 = run_stage(model.stage4_1, x4)
    x5 = run_stage(model.stage4_2, x5)
    return x3, x4, x5


if __name__ == "__main__":
    key = jax.random.PRNGKey(0)
    k_params, k_x = jax.random.split(key)

    model = DFNetV2Pallas(k_params)
    x = jax.random.normal(k_x, (2, 3, 64, 64), dtype=jnp.float32)

    outs = jax.block_until_ready(model(x))
    refs = jax.block_until_ready(reference_forward(model, x))

    expected_shapes = ((2, 128, 8, 8), (2, 256, 4, 4), (2, 512, 2, 2))
    for name, o, r, es in zip(("x3", "x4", "x5"), outs, refs, expected_shapes):
        assert o.shape == es, f"{name}: shape {o.shape} != expected {es}"
        denom = float(jnp.max(jnp.abs(r))) + 1e-6
        rel = float(jnp.max(jnp.abs(o - r))) / denom
        assert rel < 5e-2, f"{name}: relative error {rel:.4f} vs reference conv"

    print("KERNEL_OK")
</pallas_src>

<mosaic_0001>
module attributes {stable_mosaic.version = 11 : i64} {
  func.func @_conv_bn_kernel(%arg0: i32, %arg1: i32, %arg2: i32, %arg3: i32, %arg4: memref<1x1x256x128xf32, #tpu.memory_space<vmem>>, %arg5: memref<1x128x128xf32, #tpu.memory_space<vmem>>, %arg6: memref<1x128xf32, #tpu.memory_space<vmem>>, %arg7: memref<1x128xf32, #tpu.memory_space<vmem>>, %arg8: memref<1x256x128xf32, #tpu.memory_space<vmem>>, %arg9: memref<256x128xf32, #tpu.memory_space<vmem>>) attributes {dimension_semantics = [#tpu.dimension_semantics<parallel>, #tpu.dimension_semantics<parallel>, #tpu.dimension_semantics<parallel>, #tpu.dimension_semantics<arbitrary>], iteration_bounds = array<i64: 2, 4, 1, 9>, scalar_prefetch = 0 : i64, scratch_operands = 1 : i64, tpu.core_type = #tpu.core_type<tc>, window_params = [{transform_indices = @transform_0, window_bounds = array<i64: 1, 1, 256, 128>}, {transform_indices = @transform_1, window_bounds = array<i64: 1, 128, 128>}, {transform_indices = @transform_2, window_bounds = array<i64: 1, 128>}, {transform_indices = @transform_3, window_bounds = array<i64: 1, 128>}, {transform_indices = @transform_4, window_bounds = array<i64: 1, 256, 128>}]} {
    %c0_i32 = arith.constant 0 : i32
    %0 = arith.cmpi eq, %arg3, %c0_i32 : i32
    %1 = arith.extui %0 : i1 to i32
    %c0_i32_0 = arith.constant 0 : i32
    %2 = arith.cmpi ne, %1, %c0_i32_0 : i32
    scf.if %2 {
      %cst_12 = arith.constant 0.000000e+00 : f32
      %14 = vector.broadcast %cst_12 : f32 to vector<256x128xf32>
      %c0_13 = arith.constant 0 : index
      %c0_14 = arith.constant 0 : index
      %15 = vector.load %arg9[%c0_13, %c0_14] : memref<256x128xf32, #tpu.memory_space<vmem>>, vector<256x128xf32>
      tpu.vector_store %arg9[%c0_13, %c0_14], %14 {strides = array<i32>} : memref<256x128xf32, #tpu.memory_space<vmem>>, vector<256x128xf32>,
    } else {
    }
    %c0 = arith.constant 0 : index
    %c0_1 = arith.constant 0 : index
    %3 = vector.load %arg9[%c0, %c0_1] : memref<256x128xf32, #tpu.memory_space<vmem>>, vector<256x128xf32>
    %c0_2 = arith.constant 0 : index
    %c0_3 = arith.constant 0 : index
    %c0_4 = arith.constant 0 : index
    %c0_5 = arith.constant 0 : index
    %4 = vector.load %arg4[%c0_2, %c0_3, %c0_4, %c0_5] : memref<1x1x256x128xf32, #tpu.memory_space<vmem>>, vector<1x1x256x128xf32>
    %5 = vector.shape_cast %4 : vector<1x1x256x128xf32> to vector<256x128xf32>
    %c0_6 = arith.constant 0 : index
    %c0_7 = arith.constant 0 : index
    %c0_8 = arith.constant 0 : index
    %6 = vector.load %arg5[%c0_6, %c0_7, %c0_8] : memref<1x128x128xf32, #tpu.memory_space<vmem>>, vector<1x128x128xf32>
    %7 = vector.shape_cast %6 : vector<1x128x128xf32> to vector<128x128xf32>
    %cst = arith.constant dense<0.000000e+00> : vector<256x128xf32>
    %8 = tpu.matmul %5, %7, %cst {dimension_numbers = #tpu.dot_dimension_numbers<[1], [0], [0], [1], [0, 0, 1, 1], [], []>} : vector<256x128xf32>, vector<128x128xf32>, vector<256x128xf32> -> vector<256x128xf32>
    %9 = arith.addf %3, %8 : vector<256x128xf32>
    %c0_9 = arith.constant 0 : index
    %c0_10 = arith.constant 0 : index
    %10 = vector.load %arg9[%c0_9, %c0_10] : memref<256x128xf32, #tpu.memory_space<vmem>>, vector<256x128xf32>
    tpu.vector_store %arg9[%c0_9, %c0_10], %9 {strides = array<i32>} : memref<256x128xf32, #tpu.memory_space<vmem>>, vector<256x128xf32>,
    %c8_i32 = arith.constant 8 : i32
    %11 = arith.cmpi eq, %arg3, %c8_i32 : i32
    %12 = arith.extui %11 : i1 to i32
    %c0_i32_11 = arith.constant 0 : i32
    %13 = arith.cmpi ne, %12, %c0_i32_11 : i32
    scf.if %13 {
      %c0_12 = arith.constant 0 : index
      %c0_13 = arith.constant 0 : index
      %14 = vector.load %arg9[%c0_12, %c0_13] : memref<256x128xf32, #tpu.memory_space<vmem>>, vector<256x128xf32>
      %c0_14 = arith.constant 0 : index
      %c0_15 = arith.constant 0 : index
      %15 = vector.load %arg6[%c0_14, %c0_15] : memref<1x128xf32, #tpu.memory_space<vmem>>, vector<1x128xf32>
      %16 = vector.broadcast %15 : vector<1x128xf32> to vector<256x128xf32>
      %17 = arith.mulf %14, %16 : vector<256x128xf32>
      %c0_16 = arith.constant 0 : index
      %c0_17 = arith.constant 0 : index
      %18 = vector.load %arg7[%c0_16, %c0_17] : memref<1x128xf32, #tpu.memory_space<vmem>>, vector<1x128xf32>
      %19 = vector.broadcast %18 : vector<1x128xf32> to vector<256x128xf32>
      %20 = arith.addf %17, %19 : vector<256x128xf32>
      %cst_18 = arith.constant 0.000000e+00 : f32
      %21 = vector.broadcast %cst_18 : f32 to vector<256x128xf32>
      %22 = arith.maximumf %20, %21 : vector<256x128xf32>
      %c0_19 = arith.constant 0 : index
      %c0_20 = arith.constant 0 : index
      %c0_21 = arith.constant 0 : index
      %23 = vector.load %arg8[%c0_19, %c0_20, %c0_21] : memref<1x256x128xf32, #tpu.memory_space<vmem>>, vector<1x256x128xf32>
      %24 = vector.shape_cast %23 : vector<1x256x128xf32> to vector<256x128xf32>
      %25 = vector.shape_cast %22 : vector<256x128xf32> to vector<1x256x128xf32>
      tpu.vector_store %arg8[%c0_19, %c0_20, %c0_21], %25 {strides = array<i32>} : memref<1x256x128xf32, #tpu.memory_space<vmem>>, vector<1x256x128xf32>,
    } else {
    }
    return
  }
  func.func @transform_0(%arg0: i32, %arg1: i32, %arg2: i32, %arg3: i32) -> (i32, i32, i32, i32) {
    %c0_i32 = arith.constant 0 : i32
    %c0_i32_0 = arith.constant 0 : i32
    return %arg3, %arg0, %arg1, %c0_i32 : i32, i32, i32, i32
  }
  func.func @transform_1(%arg0: i32, %arg1: i32, %arg2: i32, %arg3: i32) -> (i32, i32, i32) {
    %c0_i32 = arith.constant 0 : i32
    %c0_i32_0 = arith.constant 0 : i32
    return %arg3, %c0_i32, %arg2 : i32, i32, i32
  }
  func.func @transform_2(%arg0: i32, %arg1: i32, %arg2: i32, %arg3: i32) -> (i32, i32) {
    %c0_i32 = arith.constant 0 : i32
    %c0_i32_0 = arith.constant 0 : i32
    return %c0_i32, %arg2 : i32, i32
  }
  func.func @transform_3(%arg0: i32, %arg1: i32, %arg2: i32, %arg3: i32) -> (i32, i32) {
    %c0_i32 = arith.constant 0 : i32
    %c0_i32_0 = arith.constant 0 : i32
    return %c0_i32, %arg2 : i32, i32
  }
  func.func @transform_4(%arg0: i32, %arg1: i32, %arg2: i32, %arg3: i32) -> (i32, i32, i32) {
    %c0_i32 = arith.constant 0 : i32
    return %arg0, %arg1, %arg2 : i32, i32, i32
  }
}

</mosaic_0001>

<bundles_post_ra>
// kernel: conv_bn_act.1
= control target key start
LH: loop header
LB: loop body
LE: loop exit
PB: predicated region body
PF: predicated region fallthrough
CT: control target
= control target key end

     0   :  { %9 = vsyncpa [#allocation4], 0  ;;  %s1823_s0 = inlined_call_operand.vmem [shape: f32[9,2,1024,128], index: 0, kind: input, shape index: {}]   ;;  %s1824_s1 = inlined_call_operand.vmem [shape: f32[9,128,128], index: 1, kind: input, shape index: {}]   ;;  %s1825_s2 = inlined_call_operand.vmem [shape: f32[1,128], index: 2, kind: input, shape index: {}]   ;;  %s1826_s3 = inlined_call_operand.vmem [shape: f32[1,128], index: 3, kind: input, shape index: {}]   ;;  %s1827_s4 = inlined_call_operand.hbm [shape: f32[2,1024,128], index: 4, kind: output, shape index: {}]  }
   0x1   :  { %11 = vsyncpa [#allocation4 + $0x1], 0  ;;  %s1488_s15 = smov 0   ;;  %s1490_s16 = smov 0  }
   0x2   :  { %s1492_s17 = smov 0   ;;  %s1494_s18 = smov 0  }
   0x3   :  { %s1496_s19 = smov 0   ;;  %s1498_s20 = smov 0  }
   0x4   :  { %s1500_s21 = smov 0   ;;  %s1502_s22 = smov 0  }
   0x5   :  { %s1504_s23 = smov 0   ;;  %s1506_s24 = smov 0  }
   0x6 LB: > { %1834 = sst [smem:[#allocation6_spill]] %s1445_s21  ;;  %s1056_s25 = sadd.s32 4294967295, %s1457_s24   ;;  %s1457_s24 = sphi %s1506_s24, %s17_s24   ;;  %s1453_s23 = sphi %s1504_s23, %s1850_s23   ;;  %s1449_s22 = sphi %s1502_s22, %s1849_s22   ;;  %s1445_s21 = sphi %s1500_s21, %s1848_s21   ;;  %s1441_s20 = sphi %s1498_s20, %s1847_s20   ;;  %s1437_s19 = sphi %s1496_s19, %s1846_s19   ;;  %s1433_s18 = sphi %s1494_s18, %s1845_s18   ;;  %s1429_s17 = sphi %s1492_s17, %s1853_s17   ;;  %s1425_s16 = sphi %s1490_s16, %s1852_s16   ;;  %s1421_s15 = sphi %s1488_s15, %s1851_s15  }
   0x7   : > { %1835 = sst [smem:[#allocation7_spill]] %s1449_s22  ;;  %s1057_s26 = sadd.s32 4294967294, %s1457_s24  }
   0x8   : > { %1836 = sst [smem:[#allocation8_spill]] %s1453_s23  ;;  %s32_s27 = sadd.s32 1, %s1445_s21 }
   0x9   : > { %p33_p0 = scmp.ge.s32.totalorder %s32_s27, 9  ;;  %s39_s28 = sadd.s32 1, %s1449_s22 }
   0xa   : > { %s43_s29 = sadd.s32 1, %s1453_s23  ;;  %p174_p1 = scmp.ne.s32.totalorder %s1429_s17, %s1425_s16 }
   0xb   : > { %s1855_s27 = smov (%p33_p0, %s32_s27), 0  ;;  %s1857_s28 = smov (!%p33_p0, %s39_s28), %s1449_s22 }
   0xc   : > { %1837 = sst [smem:[#allocation9_spill]] %s1855_s27  ;;  %p175_p2 = scmp.eq.s32.totalorder %s1056_s25, 71 }
   0xd   : > { %p180_p3 = scmp.ne.s32.totalorder %s1425_s16, %s1421_s15  ;;  %p41_p4 = scmp.ge.s32.totalorder %s1857_s28, 4 }
   0xe   : > { %p181_p5 = scmp.eq.s32.totalorder %s1057_s26, 71  ;;  %p1550_p6 = por %p175_p2, %p174_p1 }
   0xf   : > { %s1859_s28 = smov (%p41_p4, %s1857_s28), 0  ;;  %s1861_s29 = smov (!%p41_p4, %s43_s29), %s1453_s23 }
  0x10   : > { %1839 = sst [smem:[#allocation10_spill]] %s1859_s28  ;;  %p1557_p7 = por %p181_p5, %p180_p3 }
  0x11   : > { %p1062_p8 = scmp.ge.s32.totalorder %s1457_s24, 1  ;;  %p45_p9 = scmp.ge.s32.totalorder %s1861_s29, 2 }
  0x12   : > { %p239_p10 = scmp.lt.s32.totalorder %s1457_s24, 73  ;;  %s158_s6 = ssub.s32 %s1449_s22, %s1859_s28 }
  0x13   : > { %s1863_s29 = smov (%p45_p9, %s1861_s29), 0  ;;  %s164_s9 = sadd.s32 1, %s1429_s17 }
  0x14   : > { %1841 = sst [smem:[#allocation11_spill]] %s1863_s29  ;;  %p240_p11 = pnand %p1062_p8, %p239_p10 }
  0x15   : > { %s157_s7 = ssub.s32 %s1453_s23, %s1863_s29  ;;  %s1833_s11 = sand.u32 (!%p240_p11), 1, %s1425_s16  }
  0x16   : > { %s159_s8 = sor.u32 %s158_s6, %s157_s7  ;;  %243 = sbr.rel (%p240_p11) target bundleno = 373 (0x175), region = 36 }
  0x17   : > { %p162_p12 = scmp.eq.s32.totalorder %s159_s8, 0  ;;  %s1575_s12 = sshll.u32 (!%p240_p11), %s1437_s19, 5 }
  0x18   : > { %s1063_s13 = sshll.u32 (!%p240_p11), %s1833_s11, 8  ;;  %p288_p13 = scmp.lt.s32.totalorder (!%p240_p11), %s1433_s18, 8 }
  0x19   : > { %s1571_s10 = scalar_select %p162_p12, %s1429_s17, %s164_s9  }
  0x1a   : > { %p290_p0 = scmp.lt.s32.totalorder (!%p240_p11), %s1441_s20, 1  ;;  %p292_p1 = scmp.lt.s32.totalorder (!%p240_p11), %s1575_s12, 127 }
  0x1b   : > { %1842 = sst [smem:[#allocation12_spill]] %s1571_s10  ;;  %s1595_s10 = scalar_lea.vmem (!%p240_p11), [#allocation3], %s1063_s13 }
  0x1c   : > { %p1070_p2 = scmp.ne.s32.totalorder (!%p240_p11), %s1433_s18, 0 }
  0x1d   : > { %s289_s14 = scalar_select %p288_p13, %s1433_s18, 8 }
  0x1e   : > { %s291_s25 = scalar_select %p290_p0, %s1441_s20, 1 }
  0x1f   : > { %s1066_s26 = sshll.u32 %s289_s14, 8  ;;  %s1080_s7 = sshll.u32 %s289_s14, 7  ;;  %v1459_v0 = vmov (!%p1070_p2), 0.0  }
  0x20   : > { %s1065_s6 = sshll.u32 %s291_s25, 7  ;;  %s1588_s28 = scalar_lea.vmem %s1824_s1, %s1080_s7  ;;  %320 = vst [vmem:[#allocation2] sm:$0xff] (!%p1070_p2), %v1459_v0  ;;  %321 = vst [vmem:[#allocation2 + $0x8] sm:$0xff] (!%p1070_p2), %v1459_v0 }
  0x21   : > { %s293_s8 = scalar_select %p292_p1, %s1575_s12, 127 }
  0x22   : > { %319 = sbr.rel (%p1070_p2) target bundleno = 49 (0x31), region = 40  ;;  %322 = vst [vmem:[#allocation2 + $0x10] sm:$0xff] (!%p1070_p2), %v1459_v0  ;;  %323 = vst [vmem:[#allocation2 + $0x18] sm:$0xff] (!%p1070_p2), %v1459_v0 }
  0x23   : > { %s295_s19 = sadd.s32 %s1065_s6, %s293_s8  ;;  %324 = vst [vmem:[#allocation2 + $0x20] sm:$0xff] (!%p1070_p2), %v1459_v0  ;;  %325 = vst [vmem:[#allocation2 + $0x28] sm:$0xff] (!%p1070_p2), %v1459_v0 }
  0x24   : > { %s297_s27 = sadd.s32 %s1066_s26, %s295_s19  ;;  %326 = vst [vmem:[#allocation2 + $0x30] sm:$0xff] (!%p1070_p2), %v1459_v0  ;;  %327 = vst [vmem:[#allocation2 + $0x38] sm:$0xff] (!%p1070_p2), %v1459_v0 }
  0x25   : > { %s1067_s23 = sshll.u32 %s297_s27, 3  ;;  %328 = vst [vmem:[#allocation2 + $0x40] sm:$0xff] (!%p1070_p2), %v1459_v0  ;;  %329 = vst [vmem:[#allocation2 + $0x48] sm:$0xff] (!%p1070_p2), %v1459_v0 }
  0x26   : > { %s1593_s11 = scalar_lea.vmem %s1823_s0, %s1067_s23  ;;  %330 = vst [vmem:[#allocation2 + $0x50] sm:$0xff] (!%p1070_p2), %v1459_v0  ;;  %331 = vst [vmem:[#allocation2 + $0x58] sm:$0xff] (!%p1070_p2), %v1459_v0 }
  0x27   : > { %332 = vst [vmem:[#allocation2 + $0x60] sm:$0xff] (!%p1070_p2), %v1459_v0  ;;  %333 = vst [vmem:[#allocation2 + $0x68] sm:$0xff] (!%p1070_p2), %v1459_v0 }
  0x28   : > { %334 = vst [vmem:[#allocation2 + $0x70] sm:$0xff] (!%p1070_p2), %v1459_v0  ;;  %335 = vst [vmem:[#allocation2 + $0x78] sm:$0xff] (!%p1070_p2), %v1459_v0 }
  0x29   : > { %336 = vst [vmem:[#allocation2 + $0x80] sm:$0xff] %v1459_v0  ;;  %337 = vst [vmem:[#allocation2 + $0x88] sm:$0xff] %v1459_v0 }
  0x2a   : > { %338 = vst [vmem:[#allocation2 + $0x90] sm:$0xff] %v1459_v0  ;;  %339 = vst [vmem:[#allocation2 + $0x98] sm:$0xff] %v1459_v0 }
  0x2b   : > { %340 = vst [vmem:[#allocation2 + $0xa0] sm:$0xff] %v1459_v0  ;;  %341 = vst [vmem:[#allocation2 + $0xa8] sm:$0xff] %v1459_v0 }
  0x2c   : > { %342 = vst [vmem:[#allocation2 + $0xb0] sm:$0xff] %v1459_v0  ;;  %343 = vst [vmem:[#allocation2 + $0xb8] sm:$0xff] %v1459_v0 }
  0x2d   : > { %344 = vst [vmem:[#allocation2 + $0xc0] sm:$0xff] %v1459_v0  ;;  %345 = vst [vmem:[#allocation2 + $0xc8] sm:$0xff] %v1459_v0 }
  0x2e   : > { %346 = vst [vmem:[#allocation2 + $0xd0] sm:$0xff] %v1459_v0  ;;  %347 = vst [vmem:[#allocation2 + $0xd8] sm:$0xff] %v1459_v0 }
  0x2f   : > { %348 = vst [vmem:[#allocation2 + $0xe0] sm:$0xff] %v1459_v0  ;;  %349 = vst [vmem:[#allocation2 + $0xe8] sm:$0xff] %v1459_v0 }
  0x30   : > { %350 = vst [vmem:[#allocation2 + $0xf0] sm:$0xff] %v1459_v0  ;;  %351 = vst [vmem:[#allocation2 + $0xf8] sm:$0xff] %v1459_v0 }
  0x31 PF: > { %v416_v1 = vld [vmem:[%s1588_s28] sm:$0xff]  ;;  %v417_v2 = vld [vmem:[%s1588_s28 + $0x8] sm:$0xff]  ;;  %v418_v3 = vld [vmem:[%s1588_s28 + $0x10] sm:$0xff]  ;;  %p1071_p3 = scmp.ne.s32.totalorder %s1433_s18, 8 }
  0x32   : > { %v1209_v4 = vpack.c.bf16 %v417_v2, %v416_v1  ;;  %v419_v5 = vld [vmem:[%s1588_s28 + $0x18] sm:$0xff]  ;;  %v420_v7 = vld [vmem:[%s1588_s28 + $0x20] sm:$0xff]  ;;  %v421_v8 = vld [vmem:[%s1588_s28 + $0x28] sm:$0xff] }
  0x33   : > { %v1213_v6 = vpack.c.bf16 %v419_v5, %v418_v3  ;;  %v1217_v9 = vpack.c.bf16 %v421_v8, %v420_v7  ;;  %v384_v10 = vld [vmem:[%s1593_s11] sm:$0xff]  ;;  %v422_v12 = vld [vmem:[%s1588_s28 + $0x30] sm:$0xff]  ;;  %v423_v13 = vld [vmem:[%s1588_s28 + $0x38] sm:$0xff] }
  0x34   : > { %1210 = vmatprep.subr.bf16.mxu0 %v1209_v4  ;;  %1241 = vmatprep.subr.bf16.mxu1 %v1209_v4  ;;  %v400_v11 = vld [vmem:[%s1593_s11 + $0x80] sm:$0xff]  ;;  %v1221_v14 = vpack.c.bf16 %v423_v13, %v422_v12  ;;  %v425_v16 = vld [vmem:[%s1588_s28 + $0x48] sm:$0xff]  ;;  %v426_v18 = vld [vmem:[%s1588_s28 + $0x50] sm:$0xff] }
  0x35   : > { %1212 = vmatpush3.bf16.msra.mxu0 %v1209_v4  ;;  %1249 = vmatpush3.bf16.msra.mxu1 %v1209_v4  ;;  %v424_v15 = vld [vmem:[%s1588_s28 + $0x40] sm:$0xff]  ;;  %v427_v19 = vld [vmem:[%s1588_s28 + $0x58] sm:$0xff]  ;;  %v429_v22 = vld [vmem:[%s1588_s28 + $0x68] sm:$0xff] }
  0x36   : > { %1214 = vmatprep.subr.bf16.mxu0 %v1213_v6  ;;  %1242 = vmatprep.subr.bf16.mxu1 %v1213_v6  ;;  %v1225_v17 = vpack.c.bf16 %v425_v16, %v424_v15  ;;  %v1229_v20 = vpack.c.bf16 %v427_v19, %v426_v18  ;;  %v428_v21 = vld [vmem:[%s1588_s28 + $0x60] sm:$0xff]  ;;  %v430_v24 = vld [vmem:[%s1588_s28 + $0x70] sm:$0xff]  ;;  %v431_v25 = vld [vmem:[%s1588_s28 + $0x78] sm:$0xff] }
  0x37   : > { %1161 = vmatprep.mubr.f32.mxu0 %v384_v10  ;;  %1185 = vmatprep.mubr.f32.mxu1 %v400_v11  ;;  %v1233_v23 = vpack.c.bf16 %v429_v22, %v428_v21  ;;  %v1237_v26 = vpack.c.bf16 %v431_v25, %v430_v24  ;;  %v385_v27 = vld [vmem:[%s1593_s11 + $0x8] sm:$0xff]  ;;  %v386_v29 = vld [vmem:[%s1593_s11 + $0x10] sm:$0xff]  ;;  %v387_v31 = vld [vmem:[%s1593_s11 + $0x18] sm:$0xff] }
  0x38   : > { %v401_v28 = vld [vmem:[%s1593_s11 + $0x88] sm:$0xff]  ;;  %v402_v30 = vld [vmem:[%s1593_s11 + $0x90] sm:$0xff]  ;;  %v403_v32 = vld [vmem:[%s1593_s11 + $0x98] sm:$0xff] }
  0x39   : > { %1216 = vmatpush3.bf16.msra.mxu0 %v1213_v6  ;;  %1250 = vmatpush3.bf16.msra.mxu1 %v1213_v6  ;;  %v388_v33 = vld [vmem:[%s1593_s11 + $0x20] sm:$0xff]  ;;  %v389_v35 = vld [vmem:[%s1593_s11 + $0x28] sm:$0xff]  ;;  %v390_v37 = vld [vmem:[%s1593_s11 + $0x30] sm:$0xff] }
  0x3a   : > { %1218 = vmatprep.subr.bf16.mxu0 %v1217_v9  ;;  %1243 = vmatprep.subr.bf16.mxu1 %v1217_v9  ;;  %v404_v34 = vld [vmem:[%s1593_s11 + $0xa0] sm:$0xff]  ;;  %v405_v36 = vld [vmem:[%s1593_s11 + $0xa8] sm:$0xff]  ;;  %v406_v38 = vld [vmem:[%s1593_s11 + $0xb0] sm:$0xff] }
  0x3b   : > { %v391_v39 = vld [vmem:[%s1593_s11 + $0x38] sm:$0xff]  ;;  %v392_v41 = vld [vmem:[%s1593_s11 + $0x40] sm:$0xff]  ;;  %v393_v43 = vld [vmem:[%s1593_s11 + $0x48] sm:$0xff] }
  0x3c   : > { %v407_v40 = vld [vmem:[%s1593_s11 + $0xb8] sm:$0xff]  ;;  %v408_v42 = vld [vmem:[%s1593_s11 + $0xc0] sm:$0xff]  ;;  %v409_v44 = vld [vmem:[%s1593_s11 + $0xc8] sm:$0xff] }
  0x3d   : > { %1220 = vmatpush3.bf16.msra.mxu0 %v1217_v9  ;;  %1251 = vmatpush3.bf16.msra.mxu1 %v1217_v9  ;;  %v394_v45 = vld [vmem:[%s1593_s11 + $0x50] sm:$0xff]  ;;  %v395_v47 = vld [vmem:[%s1593_s11 + $0x58] sm:$0xff]  ;;  %v396_v49 = vld [vmem:[%s1593_s11 + $0x60] sm:$0xff] }
  0x3e   : > { %1222 = vmatprep.subr.bf16.mxu0 %v1221_v14  ;;  %1244 = vmatprep.subr.bf16.mxu1 %v1221_v14  ;;  %v410_v46 = vld [vmem:[%s1593_s11 + $0xd0] sm:$0xff]  ;;  %v411_v48 = vld [vmem:[%s1593_s11 + $0xd8] sm:$0xff]  ;;  %v412_v50 = vld [vmem:[%s1593_s11 + $0xe0] sm:$0xff] }
  0x3f   : > { %v397_v51 = vld [vmem:[%s1593_s11 + $0x68] sm:$0xff]  ;;  %v398_v53 = vld [vmem:[%s1593_s11 + $0x70] sm:$0xff]  ;;  %v399_v55 = vld [vmem:[%s1593_s11 + $0x78] sm:$0xff] }
  0x40   : > { %v413_v52 = vld [vmem:[%s1593_s11 + $0xe8] sm:$0xff]  ;;  %v414_v54 = vld [vmem:[%s1593_s11 + $0xf0] sm:$0xff]  ;;  %v415_v56 = vld [vmem:[%s1593_s11 + $0xf8] sm:$0xff] }
  0x41   : > { %1224 = vmatpush3.bf16.msra.mxu0 %v1221_v14  ;;  %1252 = vmatpush3.bf16.msra.mxu1 %v1221_v14  ;;  %v353_v57 = vld [vmem:[#allocation2 + $0x8] sm:$0xff]  ;;  %v352_v59 = vld [vmem:[#allocation2] sm:$0xff]  ;;  %v355_v5 = vld [vmem:[#allocation2 + $0x18] sm:$0xff] }
  0x42   : > { %1226 = vmatprep.subr.bf16.mxu0 %v1225_v17  ;;  %1245 = vmatprep.subr.bf16.mxu1 %v1225_v17  ;;  %v369_v58 = vld [vmem:[#allocation2 + $0x88] sm:$0xff]  ;;  %v368_v60 = vld [vmem:[#allocation2 + $0x80] sm:$0xff]  ;;  %v371_v6 = vld [vmem:[#allocation2 + $0x98] sm:$0xff] }
  0x43   : > { %v354_v7 = vld [vmem:[#allocation2 + $0x10] sm:$0xff]  ;;  %v373_v18 = vld [vmem:[#allocation2 + $0xa8] sm:$0xff]  ;;  %v356_v19 = vld [vmem:[#allocation2 + $0x20] sm:$0xff] }
  0x44   : > { %v370_v8 = vld [vmem:[#allocation2 + $0x90] sm:$0xff] }
  0x45   : > { %1228 = vmatpush3.bf16.msra.mxu0 %v1225_v17  ;;  %1253 = vmatpush3.bf16.msra.mxu1 %v1225_v17  ;;  %v357_v17 = vld [vmem:[#allocation2 + $0x28] sm:$0xff] }
  0x46   : > { %1230 = vmatprep.subr.bf16.mxu0 %v1229_v20  ;;  %1246 = vmatprep.subr.bf16.mxu1 %v1229_v20 }
  0x49   : > { %1232 = vmatpush3.bf16.msra.mxu0 %v1229_v20  ;;  %1254 = vmatpush3.bf16.msra.mxu1 %v1229_v20  ;;  %v372_v20 = vld [vmem:[#allocation2 + $0xa0] sm:$0xff] }
  0x4a   : > { %1234 = vmatprep.subr.bf16.mxu0 %v1233_v23  ;;  %1247 = vmatprep.subr.bf16.mxu1 %v1233_v23 }
  0x4d   : > { %1236 = vmatpush3.bf16.msra.mxu0 %v1233_v23  ;;  %1255 = vmatpush3.bf16.msra.mxu1 %v1233_v23 }
  0x4e   : > { %1238 = vmatprep.subr.bf16.mxu0 %v1237_v26  ;;  %1248 = vmatprep.subr.bf16.mxu1 %v1237_v26 }
  0x51   : > { %1240 = vmatpush3.bf16.msra.mxu0 %v1237_v26  ;;  %1256 = vmatpush3.bf16.msra.mxu1 %v1237_v26 }
  0x54   : > { %1162 = vmatmul.mubr.f32.vlgmr.msra.gmra.mrb[0].mxu0 %v385_v27  ;;  %1186 = vmatmul.mubr.f32.vlgmr.msra.gmra.mrb[0].mxu1 %v401_v28 }
  0x55   : > { %1164 = vmatprep.mubr.f32.mxu0 %v386_v29  ;;  %1188 = vmatprep.mubr.f32.mxu1 %v402_v30  ;;  %v359_v29 = vld [vmem:[#allocation2 + $0x38] sm:$0xff] }
  0x56   : > { %v375_v30 = vld [vmem:[#allocation2 + $0xb8] sm:$0xff] }
  0x58   : > { %1165 = vmatmul.mubr.f32.gmra.mrb[2].mxu0 %v387_v31  ;;  %1189 = vmatmul.mubr.f32.gmra.mrb[2].mxu1 %v403_v32  ;;  %v358_v31 = vld [vmem:[#allocation2 + $0x30] sm:$0xff] }
  0x59   : > { %1167 = vmatprep.mubr.f32.mxu0 %v388_v33  ;;  %1191 = vmatprep.mubr.f32.mxu1 %v404_v34  ;;  %v374_v32 = vld [vmem:[#allocation2 + $0xb0] sm:$0xff] }
  0x5c   : > { %1168 = vmatmul.mubr.f32.gmra.mrb[4].mxu0 %v389_v35  ;;  %1192 = vmatmul.mubr.f32.gmra.mrb[4].mxu1 %v405_v36 }
  0x5d   : > { %1170 = vmatprep.mubr.f32.mxu0 %v390_v37  ;;  %1194 = vmatprep.mubr.f32.mxu1 %v406_v38 }
  0x60   : > { %1171 = vmatmul.mubr.f32.gmra.mrb[6].mxu0 %v391_v39  ;;  %1195 = vmatmul.mubr.f32.gmra.mrb[6].mxu1 %v407_v40 }
  0x61   : > { %1173 = vmatprep.mubr.f32.mxu0 %v392_v41  ;;  %1197 = vmatprep.mubr.f32.mxu1 %v408_v42  ;;  %v361_v41 = vld [vmem:[#allocation2 + $0x48] sm:$0xff] }
  0x62   : > { %v377_v42 = vld [vmem:[#allocation2 + $0xc8] sm:$0xff] }
  0x64   : > { %1174 = vmatmul.mubr.f32.gmra.mrb[8].mxu0 %v393_v43  ;;  %1198 = vmatmul.mubr.f32.gmra.mrb[8].mxu1 %v409_v44  ;;  %v360_v43 = vld [vmem:[#allocation2 + $0x40] sm:$0xff] }
  0x65   : > { %1176 = vmatprep.mubr.f32.mxu0 %v394_v45  ;;  %1200 = vmatprep.mubr.f32.mxu1 %v410_v46  ;;  %v376_v44 = vld [vmem:[#allocation2 + $0xc0] sm:$0xff] }
  0x68   : > { %1177 = vmatmul.mubr.f32.gmra.mrb[10].mxu0 %v395_v47  ;;  %1201 = vmatmul.mubr.f32.gmra.mrb[10].mxu1 %v411_v48 }
  0x69   : > { %1179 = vmatprep.mubr.f32.mxu0 %v396_v49  ;;  %1203 = vmatprep.mubr.f32.mxu1 %v412_v50 }
  0x6c   : > { %1180 = vmatmul.mubr.f32.gmra.mrb[12].mxu0 %v397_v51  ;;  %1204 = vmatmul.mubr.f32.gmra.mrb[12].mxu1 %v413_v52 }
  0x6d   : > { %1182 = vmatprep.mubr.f32.mxu0 %v398_v53  ;;  %1206 = vmatprep.mubr.f32.mxu1 %v414_v54  ;;  %v363_v53 = vld [vmem:[#allocation2 + $0x58] sm:$0xff] }
  0x6e   : > { %v379_v54 = vld [vmem:[#allocation2 + $0xd8] sm:$0xff] }
  0x70   : > { %1183 = vmatmul.mubr.f32.gmra.mrb[14].mxu0 %v399_v55  ;;  %1207 = vmatmul.mubr.f32.gmra.mrb[14].mxu1 %v415_v56  ;;  %v362_v55 = vld [vmem:[#allocation2 + $0x50] sm:$0xff] }
  0x71   : > { %v378_v56 = vld [vmem:[#allocation2 + $0xd0] sm:$0xff] }
 0x127   : > { %v1163_v61 = vpop.f32.mrb[0].mxu0  ;;  %v1187_v62 = vpop.f32.mrb[0].mxu1 }
 0x128   : > { %v658_v63 = vadd.f32 %v1163_v61, %v353_v57  ;;  %v674_v0 = vadd.f32 %v1187_v62, %v369_v58  ;;  %v498_v1 = vpop.f32.mrb[1].mxu0  ;;  %v578_v2 = vpop.f32.mrb[1].mxu1 }
 0x129   : > { %v657_v3 = vadd.f32 %v498_v1, %v352_v59  ;;  %v673_v4 = vadd.f32 %v578_v2, %v368_v60  ;;  %v365_v1 = vld [vmem:[#allocation2 + $0x68] sm:$0xff] }
 0x12a   : > { %690 = vst [vmem:[#allocation2 + $0x8] sm:$0xff] %v658_v63  ;;  %706 = vst [vmem:[#allocation2 + $0x88] sm:$0xff] %v674_v0  ;;  %v381_v2 = vld [vmem:[#allocation2 + $0xe8] sm:$0xff] }
 0x12b   : > { %689 = vst [vmem:[#allocation2] sm:$0xff] %v657_v3  ;;  %705 = vst [vmem:[#allocation2 + $0x80] sm:$0xff] %v673_v4  ;;  %v1166_v9 = vpop.f32.mrb[2].mxu0  ;;  %v1190_v10 = vpop.f32.mrb[2].mxu1  ;;  %v364_v3 = vld [vmem:[#allocation2 + $0x60] sm:$0xff] }
 0x12c   : > { %v660_v11 = vadd.f32 %v1166_v9, %v355_v5  ;;  %v676_v12 = vadd.f32 %v1190_v10, %v371_v6  ;;  %v508_v13 = vpop.f32.mrb[3].mxu0  ;;  %v588_v14 = vpop.f32.mrb[3].mxu1  ;;  %v380_v4 = vld [vmem:[#allocation2 + $0xe0] sm:$0xff] }
 0x12d   : > { %v659_v15 = vadd.f32 %v508_v13, %v354_v7  ;;  %v675_v16 = vadd.f32 %v588_v14, %v370_v8  ;;  %v367_v13 = vld [vmem:[#allocation2 + $0x78] sm:$0xff] }
 0x12e   : > { %692 = vst [vmem:[#allocation2 + $0x18] sm:$0xff] %v660_v11  ;;  %708 = vst [vmem:[#allocation2 + $0x98] sm:$0xff] %v676_v12  ;;  %v383_v14 = vld [vmem:[#allocation2 + $0xf8] sm:$0xff] }
 0x12f   : > { %691 = vst [vmem:[#allocation2 + $0x10] sm:$0xff] %v659_v15  ;;  %707 = vst [vmem:[#allocation2 + $0x90] sm:$0xff] %v675_v16  ;;  %v1169_v21 = vpop.f32.mrb[4].mxu0  ;;  %v1193_v22 = vpop.f32.mrb[4].mxu1  ;;  %v366_v15 = vld [vmem:[#allocation2 + $0x70] sm:$0xff] }
 0x130   : > { %v662_v23 = vadd.f32 %v1169_v21, %v357_v17  ;;  %v678_v24 = vadd.f32 %v1193_v22, %v373_v18  ;;  %v518_v25 = vpop.f32.mrb[5].mxu0  ;;  %v598_v26 = vpop.f32.mrb[5].mxu1  ;;  %v382_v16 = vld [vmem:[#allocation2 + $0xf0] sm:$0xff] }
 0x131   : > { %v661_v27 = vadd.f32 %v518_v25, %v356_v19  ;;  %v677_v28 = vadd.f32 %v598_v26, %v372_v20  ;;  %v1650_v26 = vld [vmem:[%s1825_s2] ss:$0 sm:$0xff] (!%p1071_p3) }
 0x132   : > { %694 = vst [vmem:[#allocation2 + $0x28] sm:$0xff] %v662_v23  ;;  %710 = vst [vmem:[#allocation2 + $0xa8] sm:$0xff] %v678_v24  ;;  %v725_v25 = vld [vmem:[#allocation2] sm:$0xff] (!%p1071_p3) }
 0x133   : > { %693 = vst [vmem:[#allocation2 + $0x20] sm:$0xff] %v661_v27  ;;  %709 = vst [vmem:[#allocation2 + $0xa0] sm:$0xff] %v677_v28  ;;  %v1172_v33 = vpop.f32.mrb[6].mxu0  ;;  %v1196_v34 = vpop.f32.mrb[6].mxu1  ;;  %v1655_v27 = vld [vmem:[%s1826_s3] ss:$0 sm:$0xff] (!%p1071_p3)  ;;  %v764_v28 = vmul.f32 (!%p1071_p3), %v1650_v26, %v725_v25 }
 0x134   : > { %v664_v35 = vadd.f32 %v1172_v33, %v359_v29  ;;  %v680_v36 = vadd.f32 %v1196_v34, %v375_v30  ;;  %v528_v37 = vpop.f32.mrb[7].mxu0  ;;  %v608_v38 = vpop.f32.mrb[7].mxu1  ;;  %v726_v29 = vld [vmem:[#allocation2 + $0x8] sm:$0xff] (!%p1071_p3) }
 0x135   : > { %v663_v39 = vadd.f32 %v528_v37, %v358_v31  ;;  %v679_v40 = vadd.f32 %v608_v38, %v374_v32  ;;  %v728_v31 = vld [vmem:[#allocation2 + $0x18] sm:$0xff] (!%p1071_p3)  ;;  %v765_v32 = vmul.f32 (!%p1071_p3), %v1650_v26, %v726_v29  ;;  %v803_v38 = vadd.f32 (!%p1071_p3), %v1655_v27, %v764_v28 }
 0x136   : > { %696 = vst [vmem:[#allocation2 + $0x38] sm:$0xff] %v664_v35  ;;  %712 = vst [vmem:[#allocation2 + $0xb8] sm:$0xff] %v680_v36  ;;  %v727_v30 = vld [vmem:[#allocation2 + $0x10] sm:$0xff] (!%p1071_p3)  ;;  %v767_v34 = vmul.f32 (!%p1071_p3), %v1650_v26, %v728_v31 }
 0x137   : > { %695 = vst [vmem:[#allocation2 + $0x30] sm:$0xff] %v663_v39  ;;  %711 = vst [vmem:[#allocation2 + $0xb0] sm:$0xff] %v679_v40  ;;  %v1175_v45 = vpop.f32.mrb[8].mxu0  ;;  %v1199_v46 = vpop.f32.mrb[8].mxu1  ;;  %v766_v33 = vmul.f32 (!%p1071_p3), %v1650_v26, %v727_v30 }
 0x138   : > { %v666_v47 = vadd.f32 %v1175_v45, %v361_v41  ;;  %v682_v48 = vadd.f32 %v1199_v46, %v377_v42  ;;  %v538_v49 = vpop.f32.mrb[9].mxu0  ;;  %v618_v50 = vpop.f32.mrb[9].mxu1  ;;  %v806_v45 = vadd.f32 (!%p1071_p3), %v1655_v27, %v767_v34 }
 0x139   : > { %v665_v51 = vadd.f32 %v538_v49, %v360_v43  ;;  %v681_v52 = vadd.f32 %v618_v50, %v376_v44  ;;  %v730_v36 = vld [vmem:[#allocation2 + $0x28] sm:$0xff] (!%p1071_p3)  ;;  %v804_v43 = vadd.f32 (!%p1071_p3), %v1655_v27, %v765_v32  ;;  %v805_v44 = vadd.f32 (!%p1071_p3), %v1655_v27, %v766_v33 }
 0x13a   : > { %698 = vst [vmem:[#allocation2 + $0x48] sm:$0xff] %v666_v47  ;;  %714 = vst [vmem:[#allocation2 + $0xc8] sm:$0xff] %v682_v48  ;;  %v729_v35 = vld [vmem:[#allocation2 + $0x20] sm:$0xff] (!%p1071_p3)  ;;  %v769_v40 = vmul.f32 (!%p1071_p3), %v1650_v26, %v730_v36  ;;  %v835_v48 = vmax.f32 (!%p1071_p3), %v803_v38, 0.0  ;;  %v746_v30 = vld [vmem:[#allocation2 + $0xa8] sm:$0xff] (!%p1071_p3) }
 0x13b   : > { %697 = vst [vmem:[#allocation2 + $0x40] sm:$0xff] %v665_v51  ;;  %713 = vst [vmem:[#allocation2 + $0xc0] sm:$0xff] %v681_v52  ;;  %v1178_v57 = vpop.f32.mrb[10].mxu0  ;;  %v1202_v58 = vpop.f32.mrb[10].mxu1  ;;  %v768_v39 = vmul.f32 (!%p1071_p3), %v1650_v26, %v729_v35  ;;  %v745_v29 = vld [vmem:[#allocation2 + $0xa0] sm:$0xff] (!%p1071_p3) }
 0x13c   : > { %v668_v59 = vadd.f32 %v1178_v57, %v363_v53  ;;  %v684_v60 = vadd.f32 %v1202_v58, %v379_v54  ;;  %v548_v61 = vpop.f32.mrb[11].mxu0  ;;  %v628_v62 = vpop.f32.mrb[11].mxu1  ;;  %v808_v50 = vadd.f32 (!%p1071_p3), %v1655_v27, %v769_v40  ;;  %v838_v57 = vmax.f32 (!%p1071_p3), %v806_v45, 0.0  ;;  %867 = vst [vmem:[%s1595_s10] sm:$0xff] (!%p1071_p3), %v835_v48 }
 0x13d   : > { %v667_v63 = vadd.f32 %v548_v61, %v362_v55  ;;  %v683_v0 = vadd.f32 %v628_v62, %v378_v56  ;;  %v732_v42 = vld [vmem:[#allocation2 + $0x38] sm:$0xff] (!%p1071_p3)  ;;  %v807_v49 = vadd.f32 (!%p1071_p3), %v1655_v27, %v768_v39  ;;  %v836_v55 = vmax.f32 (!%p1071_p3), %v804_v43, 0.0 }
 0x13e   : > { %700 = vst [vmem:[#allocation2 + $0x58] sm:$0xff] %v668_v59  ;;  %716 = vst [vmem:[#allocation2 + $0xd8] sm:$0xff] %v684_v60  ;;  %v731_v37 = vld [vmem:[#allocation2 + $0x30] sm:$0xff] (!%p1071_p3)  ;;  %v771_v46 = vmul.f32 (!%p1071_p3), %v1650_v26, %v732_v42  ;;  %v837_v56 = vmax.f32 (!%p1071_p3), %v805_v44, 0.0  ;;  %v748_v36 = vld [vmem:[#allocation2 + $0xb8] sm:$0xff] (!%p1071_p3)  ;;  %v784_v42 = vmul.f32 (!%p1071_p3), %v1650_v26, %v745_v29  ;;  %v785_v43 = vmul.f32 (!%p1071_p3), %v1650_v26, %v746_v30 }
 0x13f   : > { %699 = vst [vmem:[#allocation2 + $0x50] sm:$0xff] %v667_v63  ;;  %715 = vst [vmem:[#allocation2 + $0xd0] sm:$0xff] %v683_v0  ;;  %v1181_v5 = vpop.f32.mrb[12].mxu0  ;;  %v1205_v6 = vpop.f32.mrb[12].mxu1  ;;  %v770_v41 = vmul.f32 (!%p1071_p3), %v1650_v26, %v731_v37  ;;  %v839_v62 = vmax.f32 (!%p1071_p3), %v807_v49, 0.0  ;;  %v840_v63 = vmax.f32 (!%p1071_p3), %v808_v50, 0.0  ;;  %v787_v48 = vmul.f32 (!%p1071_p3), %v1650_v26, %v748_v36 }
 0x140   : > { %v670_v7 = vadd.f32 %v1181_v5, %v365_v1  ;;  %v686_v8 = vadd.f32 %v1205_v6, %v381_v2  ;;  %v558_v9 = vpop.f32.mrb[13].mxu0  ;;  %v638_v10 = vpop.f32.mrb[13].mxu1  ;;  %v810_v58 = vadd.f32 (!%p1071_p3), %v1655_v27, %v771_v46  ;;  %868 = vst [vmem:[%s1595_s10 + $0x8] sm:$0xff] (!%p1071_p3), %v836_v55  ;;  %869 = vst [vmem:[%s1595_s10 + $0x10] sm:$0xff] (!%p1071_p3), %v837_v56  ;;  %v747_v31 = vld [vmem:[#allocation2 + $0xb0] sm:$0xff] (!%p1071_p3) }
 0x141   : > { %v669_v11 = vadd.f32 %v558_v9, %v364_v3  ;;  %v685_v12 = vadd.f32 %v638_v10, %v380_v4  ;;  %724 = sbr.rel (%p1071_p3) target bundleno = 346 (0x15a), region = 44  ;;  %v809_v51 = vadd.f32 (!%p1071_p3), %v1655_v27, %v770_v41  ;;  %v734_v52 = vld [vmem:[#allocation2 + $0x48] sm:$0xff] (!%p1071_p3)  ;;  %870 = vst [vmem:[%s1595_s10 + $0x18] sm:$0xff] (!%p1071_p3), %v838_v57  ;;  %871 = vst [vmem:[%s1595_s10 + $0x20] sm:$0xff] (!%p1071_p3), %v839_v62 }
 0x142   : > { %702 = vst [vmem:[#allocation2 + $0x68] sm:$0xff] %v670_v7  ;;  %718 = vst [vmem:[#allocation2 + $0xe8] sm:$0xff] %v686_v8  ;;  %v733_v47 = vld [vmem:[#allocation2 + $0x40] sm:$0xff] (!%p1071_p3)  ;;  %v842_v3 = vmax.f32 (!%p1071_p3), %v810_v58, 0.0  ;;  %v773_v4 = vmul.f32 (!%p1071_p3), %v1650_v26, %v734_v52  ;;  %v786_v44 = vmul.f32 (!%p1071_p3), %v1650_v26, %v747_v31  ;;  %v824_v52 = vadd.f32 (!%p1071_p3), %v1655_v27, %v785_v43 }
 0x143   : > { %701 = vst [vmem:[#allocation2 + $0x60] sm:$0xff] %v669_v11  ;;  %717 = vst [vmem:[#allocation2 + $0xe0] sm:$0xff] %v685_v12  ;;  %v1184_v17 = vpop.f32.mrb[14].mxu0  ;;  %v1208_v18 = vpop.f32.mrb[14].mxu1  ;;  %v841_v0 = vmax.f32 (!%p1071_p3), %v809_v51, 0.0  ;;  %v772_v1 = vmul.f32 (!%p1071_p3), %v1650_v26, %v733_v47  ;;  %v749_v49 = vld [vmem:[#allocation2 + $0xc0] sm:$0xff] (!%p1071_p3)  ;;  %v823_v51 = vadd.f32 (!%p1071_p3), %v1655_v27, %v784_v42 }
 0x144   : > { %v672_v19 = vadd.f32 %v1184_v17, %v367_v13  ;;  %v688_v20 = vadd.f32 %v1208_v18, %v383_v14  ;;  %v568_v21 = vpop.f32.mrb[15].mxu0  ;;  %v648_v22 = vpop.f32.mrb[15].mxu1  ;;  %872 = vst [vmem:[%s1595_s10 + $0x28] sm:$0xff] (!%p1071_p3), %v840_v63  ;;  %874 = vst [vmem:[%s1595_s10 + $0x38] sm:$0xff] (!%p1071_p3), %v842_v3  ;;  %v812_v11 = vadd.f32 (!%p1071_p3), %v1655_v27, %v773_v4 }
 0x145   : > { %v671_v23 = vadd.f32 %v568_v21, %v366_v15  ;;  %v687_v24 = vadd.f32 %v648_v22, %v382_v16  ;;  %v736_v54 = vld [vmem:[#allocation2 + $0x58] sm:$0xff] (!%p1071_p3)  ;;  %873 = vst [vmem:[%s1595_s10 + $0x30] sm:$0xff] (!%p1071_p3), %v841_v0  ;;  %v811_v7 = vadd.f32 (!%p1071_p3), %v1655_v27, %v772_v1  ;;  %v741_v15 = vld [vmem:[#allocation2 + $0x80] sm:$0xff] (!%p1071_p3)  ;;  %v743_v21 = vld [vmem:[#allocation2 + $0x90] sm:$0xff] (!%p1071_p3)  ;;  %v855_v0 = vmax.f32 (!%p1071_p3), %v823_v51, 0.0 }
 0x146   : > { %704 = vst [vmem:[#allocation2 + $0x78] sm:$0xff] %v672_v19  ;;  %720 = vst [vmem:[#allocation2 + $0xf8] sm:$0xff] %v688_v20  ;;  %v735_v53 = vld [vmem:[#allocation2 + $0x50] sm:$0xff] (!%p1071_p3)  ;;  %v775_v6 = vmul.f32 (!%p1071_p3), %v1650_v26, %v736_v54  ;;  %v742_v20 = vld [vmem:[#allocation2 + $0x88] sm:$0xff] (!%p1071_p3)  ;;  %v780_v35 = vmul.f32 (!%p1071_p3), %v1650_v26, %v741_v15  ;;  %v782_v39 = vmul.f32 (!%p1071_p3), %v1650_v26, %v743_v21  ;;  %v856_v1 = vmax.f32 (!%p1071_p3), %v824_v52, 0.0 }
 0x147   : > { %703 = vst [vmem:[#allocation2 + $0x70] sm:$0xff] %v671_v23  ;;  %719 = vst [vmem:[#allocation2 + $0xf0] sm:$0xff] %v687_v24  ;;  %v774_v5 = vmul.f32 (!%p1071_p3), %v1650_v26, %v735_v53  ;;  %v843_v16 = vmax.f32 (!%p1071_p3), %v811_v7, 0.0  ;;  %v744_v22 = vld [vmem:[#allocation2 + $0x98] sm:$0xff] (!%p1071_p3)  ;;  %v844_v23 = vmax.f32 (!%p1071_p3), %v812_v11, 0.0  ;;  %v781_v38 = vmul.f32 (!%p1071_p3), %v1650_v26, %v742_v20  ;;  %v750_v54 = vld [vmem:[#allocation2 + $0xc8] sm:$0xff] (!%p1071_p3) }
 0x148   : > { %v814_v13 = vadd.f32 %v1655_v27, %v775_v6  ;;  %v783_v40 = vmul.f32 %v1650_v26, %v744_v22  ;;  %v819_v41 = vadd.f32 %v1655_v27, %v780_v35  ;;  %v821_v46 = vadd.f32 %v1655_v27, %v782_v39  ;;  %v751_v55 = vld [vmem:[#allocation2 + $0xd0] sm:$0xff]  ;;  %v752_v56 = vld [vmem:[#allocation2 + $0xd8] sm:$0xff]  ;;  %887 = vst [vmem:[%s1595_s10 + $0xa0] sm:$0xff] %v855_v0 }
 0x149   : > { %v738_v60 = vld [vmem:[#allocation2 + $0x68] sm:$0xff]  ;;  %v813_v12 = vadd.f32 %v1655_v27, %v774_v5  ;;  %875 = vst [vmem:[%s1595_s10 + $0x40] sm:$0xff] %v843_v16  ;;  %876 = vst [vmem:[%s1595_s10 + $0x48] sm:$0xff] %v844_v23  ;;  %v820_v45 = vadd.f32 %v1655_v27, %v781_v38  ;;  %v825_v53 = vadd.f32 %v1655_v27, %v786_v44 }
 0x14a   : > { %v737_v59 = vld [vmem:[#allocation2 + $0x60] sm:$0xff]  ;;  %v777_v9 = vmul.f32 %v1650_v26, %v738_v60  ;;  %v846_v25 = vmax.f32 %v814_v13, 0.0  ;;  %v822_v47 = vadd.f32 %v1655_v27, %v783_v40  ;;  %v851_v50 = vmax.f32 %v819_v41, 0.0  ;;  %v754_v62 = vld [vmem:[#allocation2 + $0xe8] sm:$0xff]  ;;  %888 = vst [vmem:[%s1595_s10 + $0xa8] sm:$0xff] %v856_v1 }
 0x14b   : > { %v776_v8 = vmul.f32 %v1650_v26, %v737_v59  ;;  %v845_v24 = vmax.f32 %v813_v12, 0.0  ;;  %v852_v57 = vmax.f32 %v820_v45, 0.0  ;;  %v853_v58 = vmax.f32 %v821_v46, 0.0 }
 0x14c   : > { %v816_v18 = vadd.f32 %v1655_v27, %v777_v9  ;;  %878 = vst [vmem:[%s1595_s10 + $0x58] sm:$0xff] %v846_v25  ;;  %v854_v59 = vmax.f32 %v822_v47, 0.0  ;;  %v826_v60 = vadd.f32 %v1655_v27, %v787_v48  ;;  %883 = vst [vmem:[%s1595_s10 + $0x80] sm:$0xff] %v851_v50  ;;  %v788_v3 = vmul.f32 %v1650_v26, %v749_v49 }
 0x14d   : > { %v740_v2 = vld [vmem:[#allocation2 + $0x78] sm:$0xff]  ;;  %v815_v17 = vadd.f32 %v1655_v27, %v776_v8  ;;  %877 = vst [vmem:[%s1595_s10 + $0x50] sm:$0xff] %v845_v24  ;;  %884 = vst [vmem:[%s1595_s10 + $0x88] sm:$0xff] %v852_v57  ;;  %v789_v6 = vmul.f32 %v1650_v26, %v750_v54  ;;  %v790_v7 = vmul.f32 %v1650_v26, %v751_v55 }
 0x14e   : > { %v739_v61 = vld [vmem:[#allocation2 + $0x70] sm:$0xff]  ;;  %v779_v14 = vmul.f32 %v1650_v26, %v740_v2  ;;  %v848_v33 = vmax.f32 %v816_v18, 0.0  ;;  %v857_v2 = vmax.f32 %v825_v53, 0.0  ;;  %v756_v4 = vld [vmem:[#allocation2 + $0xf8] sm:$0xff]  ;;  %885 = vst [vmem:[%s1595_s10 + $0x90] sm:$0xff] %v853_v58  ;;  %886 = vst [vmem:[%s1595_s10 + $0x98] sm:$0xff] %v854_v59  ;;  %v791_v8 = vmul.f32 %v1650_v26, %v752_v56 }
 0x14f   : > { %v778_v10 = vmul.f32 %v1650_v26, %v739_v61  ;;  %v847_v32 = vmax.f32 %v815_v17, 0.0  ;;  %v753_v61 = vld [vmem:[#allocation2 + $0xe0] sm:$0xff]  ;;  %v755_v63 = vld [vmem:[#allocation2 + $0xf0] sm:$0xff]  ;;  %v858_v5 = vmax.f32 %v826_v60, 0.0  ;;  %v827_v9 = vadd.f32 %v1655_v27, %v788_v3 }
 0x150   : > { %v818_v28 = vadd.f32 %v1655_v27, %v779_v14  ;;  %880 = vst [vmem:[%s1595_s10 + $0x68] sm:$0xff] %v848_v33  ;;  %889 = vst [vmem:[%s1595_s10 + $0xb0] sm:$0xff] %v857_v2  ;;  %v793_v11 = vmul.f32 %v1650_v26, %v754_v62  ;;  %v794_v12 = vmul.f32 %v1650_v26, %v755_v63 }
 0x151   : > { %v817_v19 = vadd.f32 %v1655_v27, %v778_v10  ;;  %879 = vst [vmem:[%s1595_s10 + $0x60] sm:$0xff] %v847_v32  ;;  %v792_v10 = vmul.f32 %v1650_v26, %v753_v61  ;;  %890 = vst [vmem:[%s1595_s10 + $0xb8] sm:$0xff] %v858_v5  ;;  %v828_v13 = vadd.f32 %v1655_v27, %v789_v6  ;;  %v859_v17 = vmax.f32 %v827_v9, 0.0 }
 0x152   : > { %v850_v37 = vmax.f32 %v818_v28, 0.0  ;;  %v829_v14 = vadd.f32 %v1655_v27, %v790_v7  ;;  %v830_v15 = vadd.f32 %v1655_v27, %v791_v8  ;;  %v795_v16 = vmul.f32 %v1650_v26, %v756_v4 }
 0x153   : > { %v849_v34 = vmax.f32 %v817_v19, 0.0  ;;  %v831_v18 = vadd.f32 %v1655_v27, %v792_v10  ;;  %v832_v19 = vadd.f32 %v1655_v27, %v793_v11  ;;  %v833_v20 = vadd.f32 %v1655_v27, %v794_v12  ;;  %891 = vst [vmem:[%s1595_s10 + $0xc0] sm:$0xff] %v859_v17 }
 0x154   : > { %882 = vst [vmem:[%s1595_s10 + $0x78] sm:$0xff] %v850_v37  ;;  %v860_v21 = vmax.f32 %v828_v13, 0.0  ;;  %v861_v22 = vmax.f32 %v829_v14, 0.0  ;;  %v862_v23 = vmax.f32 %v830_v15, 0.0  ;;  %v834_v24 = vadd.f32 %v1655_v27, %v795_v16 }
 0x155   : > { %881 = vst [vmem:[%s1595_s10 + $0x70] sm:$0xff] %v849_v34  ;;  %v863_v25 = vmax.f32 %v831_v18, 0.0  ;;  %v864_v28 = vmax.f32 %v832_v19, 0.0  ;;  %v865_v26 = vmax.f32 %v833_v20, 0.0 }
 0x156   : > { %892 = vst [vmem:[%s1595_s10 + $0xc8] sm:$0xff] %v860_v21  ;;  %893 = vst [vmem:[%s1595_s10 + $0xd0] sm:$0xff] %v861_v22  ;;  %v866_v29 = vmax.f32 %v834_v24, 0.0 }
 0x157   : > { %894 = vst [vmem:[%s1595_s10 + $0xd8] sm:$0xff] %v862_v23  ;;  %895 = vst [vmem:[%s1595_s10 + $0xe0] sm:$0xff] %v863_v25 }
 0x158   : > { %896 = vst [vmem:[%s1595_s10 + $0xe8] sm:$0xff] %v864_v28  ;;  %897 = vst [vmem:[%s1595_s10 + $0xf0] sm:$0xff] %v865_v26 }
 0x159   : > { %898 = vst [vmem:[%s1595_s10 + $0xf8] sm:$0xff] %v866_v29 }
 0x15a PF: > { %s1076_s18 = sshll.u32 %s1441_s20, 7  ;;  %s916_s29 = sshll.u32 %s1595_s10, 4  ;;  %s1756_s29 = int_to_ptr.vmem [resolvable:$true] %s916_s29 }
 0x15b   : > { %s913_s28 = sadd.s32 %s1076_s18, %s1575_s12  ;;  %s1843_s26 = sand.u32 1, %s1425_s16  }
 0x15c   : > { %s1077_s11 = sshll.u32 %s913_s28, 7  ;;  %s1765_s6 = scalar_lea.sflag [#allocation4], %s1843_s26 }
 0x15d   : > { %s1761_s25 = scalar_lea.hbm %s1827_s4, %s1077_s11  ;;  %s1347_s7 = scalar_lea.vmem %s1756_s29, 4096 }
 0x15e   : > { %p1348_p4 = scmp.ne.s32.totalorder %s1756_s29, %s1347_s7  ;;  %s1460_s20 = smov [#allocation3]  }
 0x15f   : > { %s1351_s10 = sshll.u32 %s1460_s20, 4  ;;  %s1352_s10 = int_to_ptr.vmem [resolvable:$false] %s1351_s10 }
 0x160   : > { %p1349_p5 = pnand %p1348_p4, %p1550_p6  ;;  %s1353_s12 = scalar_lea.vmem %s1352_s10, 8192 }
 0x161   : > { %p1354_p9 = scmp.lt.s32.totalorder %s1756_s29, %s1352_s10  ;;  %p1355_p10 = scmp.lt.s32.totalorder %s1353_s12, %s1347_s7 }
 0x162   : > { %p1350_p8 = pneg %p1349_p5 }
 0x163   : > { %p1356_p11 = por %p1355_p10, %p1354_p9 }
 0x165   : > { %p1357_p12 = pnand %p1356_p11, %p1350_p8 }
 0x167   : > { %1360 = shalt.err (!%p1357_p12)
}
 0x168   : > { %s1361_s8 = scalar_lea.hbm %s1761_s25, 4096  ;;  %s1365_s21 = scalar_lea.hbm %s1827_s4, 32768 }
 0x169   : > { %p1362_p13 = scmp.ne.s32.totalorder %s1761_s25, %s1361_s8  ;;  %p1366_p2 = scmp.lt.u32.totalorder %s1761_s25, %s1827_s4 }
 0x16a   : > { %p1367_p3 = scmp.lt.u32.totalorder %s1365_s21, %s1361_s8  ;;  %p1369_p5 = scmp.lt.u32.totalorder %s1361_s8, %s1761_s25 }
 0x16b   : > { %p1363_p0 = pnand %p1362_p13, %p1550_p6 }
 0x16c   : > { %p1368_p4 = por %p1367_p3, %p1366_p2 }
 0x16d   : > { %p1364_p1 = pneg %p1363_p0 }
 0x16e   : > { %p1370_p8 = por %p1369_p5, %p1368_p4 }
 0x170   : > { %p1371_p9 = pnand %p1370_p8, %p1364_p1 }
 0x172   : > { %1374 = shalt.err (!%p1371_p9)
}
 0x173   : > { %s1461_s27 = smov 128   ;;  %s1462_s18 = smov 8  }
 0x174   : > { %1257 = dma.vmem_to_hbm [thread:$0]  (%p1550_p6), %s1756_s29, 4096, %s1761_s25, %s1765_s6, %s1461_s27, %s1461_s27, %s1462_s18  }
 0x175 PF: > { %p1263_p10 = scmp.ge.s32.totalorder %s1457_s24, 2  ;;  %s931_s28 = sand.u32 1, %s1421_s15  }
 0x176   : > { %s932_s11 = scalar_lea.sflag [#allocation4], %s931_s28 }
 0x177   : > { %p1260_p11 = pnand %p1263_p10, %p1557_p7 }
 0x179   : > { %1416 = dma.done.wait (!%p1260_p11), %s932_s11, 4096  }
 0x17a   : > { %1418 = vsyncadd (!%p1260_p11), %s932_s11, 4294963200  ;;  %s17_s24 = sadd.s32 1, %s1457_s24   ;;  %s1844_s13 = sld [smem:[#allocation12_spill]] }
 0x17b   : > { %p14_p12 = scmp.ge.s32.totalorder %s17_s24, 74   ;;  %s1845_s18 = sld [smem:[#allocation6_spill]] }
 0x17c   : > { %s1846_s19 = sld [smem:[#allocation7_spill]]  ;;  %s1847_s20 = sld [smem:[#allocation8_spill]] }
 0x17d   : > { %s1848_s21 = sld [smem:[#allocation9_spill]]  ;;  %s1849_s22 = sld [smem:[#allocation10_spill]] }
 0x17e   : > { %s1850_s23 = sld [smem:[#allocation11_spill]]  ;;  %s1851_s15 = smov %s1425_s16 }
 0x17f   : > { %s1852_s16 = smov %s1429_s17  ;;  %16 = sbr.rel (!%p14_p12) target bundleno = 6 (0x6), region = 88 }
 0x180   : > { %s1853_s17 = smov %s1844_s13 }
 0x186   :  { %937 = vsyncpa [#allocation4], 1 }
 0x187   :  { %939 = vsyncpa [#allocation4 + $0x1], 1 }

</bundles_post_ra>
